<compile_context>
chip_gen: v5e
topology: v5e:2x2
jax: 0.10.0
libtpu: 0.0.40
codegen_flags: <defaults>
</compile_context>

<pallas_src>
import functools

import jax
import jax.numpy as jnp
from jax.experimental import pallas as pl
from jax.experimental.pallas import tpu as pltpu


def _prepare_input_kernel(x_ref, out_ref, *, mean, inv_sigma, gen_val, tm):
    """Writes one (tm, N) full-width row-tile of the (1 + N, N) zonotope matrix."""
    i = pl.program_id(0)          # row-tile index
    r0 = i * tm                   # global row offset of this tile

    tm_b, tn_b = out_ref.shape

    # Generator pattern: global_row == global_col + 1  <=>  (lrow - lcol) == 1 - r0.
    # One masked select builds zeros and the shifted diagonal in a single full-tile store.
    lrow = jax.lax.broadcasted_iota(jnp.int32, (tm_b, tn_b), 0)
    lcol = jax.lax.broadcasted_iota(jnp.int32, (tm_b, tn_b), 1)
    out_ref[...] = jnp.where((lrow - lcol) == (1 - r0),
                             jnp.float32(gen_val),
                             jnp.float32(0.0))

    # Center row (global row 0) lives only in the first row-tile; overwrite row 0.
    @pl.when(i == 0)
    def _():
        out_ref[0:1, :] = (x_ref[...] - jnp.float32(mean)) * jnp.float32(inv_sigma)


def prepare_input_1d(x: jax.Array, mean: float, sigma: float, eps: float,
                     target_tile_bytes: int = 4 << 20) -> jax.Array:
    """x: (n, n) float32 -> (1 + n*n, n*n) float32 zonotope matrix."""
    n = x.shape[-1]
    N = n * n
    M = N + 1
    x_flat = x.reshape(1, N).astype(jnp.float32)

    # Full-width row tiles: pick as many rows as fit ~target_tile_bytes per buffer,
    # rounded down to a multiple of 8 (sublane), or take the whole matrix if it fits.
    row_bytes = N * 4
    rows_fit = max(8, (target_tile_bytes // row_bytes) // 8 * 8)
    TM = M if rows_fit >= M else rows_fit
    grid = (pl.cdiv(M, TM),)

    kernel = functools.partial(
        _prepare_input_kernel,
        mean=float(mean),
        inv_sigma=1.0 / float(sigma),
        gen_val=float(eps) / float(sigma),
        tm=TM,
    )

    return pl.pallas_call(
        kernel,
        out_shape=jax.ShapeDtypeStruct((M, N), jnp.float32),
        grid=grid,
        # x stays VMEM-resident (constant block index -> no per-step re-fetch).
        in_specs=[pl.BlockSpec((1, N), lambda i: (0, 0))],
        out_specs=pl.BlockSpec((TM, N), lambda i: (i, 0)),
        compiler_params=pltpu.CompilerParams(
            dimension_semantics=("parallel",),
            vmem_limit_bytes=32 << 20),
        cost_estimate=pl.CostEstimate(
            flops=0, transcendentals=0, bytes_accessed=4 * (M * N + N)),
    )(x_flat)


def _reference(x, mean, sigma, eps):
    n = x.shape[-1]
    N = n * n
    xf = x.reshape(N).astype(jnp.float32)
    z = jnp.concatenate([xf[None, :], eps * jnp.eye(N, dtype=jnp.float32)], axis=0)
    z = z.at[0, :].add(-mean)
    return z / sigma


if __name__ == "__main__":
    # Module constants (MNIST normalization) + eps argument from __init__.
    MEAN, SIGMA, EPS = 0.1307, 0.3081, 0.1

    key = jax.random.PRNGKey(0)

    # Small case: single tile (n=16 -> output 257 x 256).
    x16 = jax.random.uniform(key, (16, 16), dtype=jnp.float32)
    out16 = jax.block_until_ready(prepare_input_1d(x16, MEAN, SIGMA, EPS))
    ref16 = _reference(x16, MEAN, SIGMA, EPS)
    assert out16.shape == (1 + 16 * 16, 16 * 16), out16.shape
    assert jnp.allclose(out16, ref16, atol=1e-5, rtol=1e-5), "mismatch vs reference (n=16)"

    # MNIST-shaped case: N=784 is not a multiple of 128 -> exercises the full-extent
    # (non-128-multiple) lane dimension path (output 785 x 784, single tile).
    x28 = jax.random.uniform(jax.random.PRNGKey(1), (28, 28), dtype=jnp.float32)
    out28 = jax.block_until_ready(prepare_input_1d(x28, MEAN, SIGMA, EPS))
    ref28 = _reference(x28, MEAN, SIGMA, EPS)
    assert out28.shape == (1 + 28 * 28, 28 * 28), out28.shape
    assert jnp.allclose(out28, ref28, atol=1e-5, rtol=1e-5), "mismatch vs reference (n=28)"

    # Larger case exercising the tiled row grid with a masked partial last row tile
    # (n=32 -> output 1025 x 1024, TM=1024, grid (2,)).
    x32 = jax.random.uniform(jax.random.PRNGKey(0), (32, 32), dtype=jnp.float32)
    out32 = jax.block_until_ready(prepare_input_1d(x32, MEAN, SIGMA, EPS))
    ref32 = _reference(x32, MEAN, SIGMA, EPS)
    assert out32.shape == (1 + 32 * 32, 32 * 32), out32.shape
    assert jnp.allclose(out32, ref32, atol=1e-5, rtol=1e-5), "mismatch vs reference (n=32)"

    print("KERNEL_OK")
</pallas_src>

<mosaic_0001>
module attributes {stable_mosaic.version = 11 : i64} {
  func.func @_prepare_input_kernel(%arg0: i32, %arg1: memref<1x256xf32, #tpu.memory_space<vmem>>, %arg2: memref<257x256xf32, #tpu.memory_space<vmem>>) attributes {dimension_semantics = [#tpu.dimension_semantics<parallel>], iteration_bounds = array<i64: 1>, scalar_prefetch = 0 : i64, scratch_operands = 0 : i64, tpu.core_type = #tpu.core_type<tc>, window_params = [{pipeline_mode = #tpu.pipeline_mode<synchronous>, transform_indices = @transform_0, window_bounds = array<i64: 1, 256>}, {transform_indices = @transform_1, window_bounds = array<i64: 257, 256>}]} {
    %c257_i32 = arith.constant 257 : i32
    %0 = arith.muli %arg0, %c257_i32 : i32
    %1 = tpu.iota {dimensions = array<i32: 0>} : vector<257x256xi32>
    %2 = tpu.iota {dimensions = array<i32: 1>} : vector<257x256xi32>
    %3 = arith.subi %1, %2 : vector<257x256xi32>
    %c1_i32 = arith.constant 1 : i32
    %4 = arith.subi %c1_i32, %0 : i32
    %5 = vector.broadcast %4 : i32 to vector<257x256xi32>
    %6 = arith.cmpi eq, %3, %5 : vector<257x256xi32>
    %cst = arith.constant 0.324569941 : f32
    %cst_0 = arith.constant 0.000000e+00 : f32
    %7 = vector.broadcast %cst : f32 to vector<257x256xf32>
    %8 = vector.broadcast %cst_0 : f32 to vector<257x256xf32>
    %9 = arith.select %6, %7, %8 : vector<257x256xi1>, vector<257x256xf32>
    %c0 = arith.constant 0 : index
    %c0_1 = arith.constant 0 : index
    %10 = vector.load %arg2[%c0, %c0_1] : memref<257x256xf32, #tpu.memory_space<vmem>>, vector<257x256xf32>
    tpu.vector_store %arg2[%c0, %c0_1], %9 {strides = array<i32>} : memref<257x256xf32, #tpu.memory_space<vmem>>, vector<257x256xf32>,
    %c0_i32 = arith.constant 0 : i32
    %11 = arith.cmpi eq, %arg0, %c0_i32 : i32
    %12 = arith.extui %11 : i1 to i32
    %c0_i32_2 = arith.constant 0 : i32
    %13 = arith.cmpi ne, %12, %c0_i32_2 : i32
    scf.if %13 {
      %c0_3 = arith.constant 0 : index
      %c0_4 = arith.constant 0 : index
      %14 = vector.load %arg1[%c0_3, %c0_4] : memref<1x256xf32, #tpu.memory_space<vmem>>, vector<1x256xf32>
      %cst_5 = arith.constant 1.307000e-01 : f32
      %15 = vector.broadcast %cst_5 : f32 to vector<1x256xf32>
      %16 = arith.subf %14, %15 : vector<1x256xf32>
      %cst_6 = arith.constant 3.24569941 : f32
      %17 = vector.broadcast %cst_6 : f32 to vector<1x256xf32>
      %18 = arith.mulf %16, %17 : vector<1x256xf32>
      %c0_7 = arith.constant 0 : index
      %c0_8 = arith.constant 0 : index
      %19 = vector.load %arg2[%c0_7, %c0_8] : memref<257x256xf32, #tpu.memory_space<vmem>>, vector<1x256xf32>
      tpu.vector_store %arg2[%c0_7, %c0_8], %18 {strides = array<i32>} : memref<257x256xf32, #tpu.memory_space<vmem>>, vector<1x256xf32>,
    } else {
    }
    return
  }
  func.func @transform_0(%arg0: i32) -> (i32, i32) {
    %c0_i32 = arith.constant 0 : i32
    %c0_i32_0 = arith.constant 0 : i32
    %c0_i32_1 = arith.constant 0 : i32
    return %c0_i32, %c0_i32_0 : i32, i32
  }
  func.func @transform_1(%arg0: i32) -> (i32, i32) {
    %c0_i32 = arith.constant 0 : i32
    %c0_i32_0 = arith.constant 0 : i32
    return %arg0, %c0_i32 : i32, i32
  }
}

</mosaic_0001>

<bundles_post_ra>
// kernel: tpu_custom_call.1
= control target key start
LH: loop header
LB: loop body
LE: loop exit
PB: predicated region body
PF: predicated region fallthrough
CT: control target
= control target key end

     0   :  { %6 = vsyncpa [#allocation3], 0  ;;  %s581_s0 = inlined_call_operand.hbm [shape: f32[1,256], index: 0, kind: input, shape index: {}]   ;;  %s582_s1 = inlined_call_operand.hbm [shape: f32[257,256], index: 1, kind: output, shape index: {}]  }
   0x1   :  { %7 = vsyncpa [#allocation4], 0  ;;  %s13_s8 = sshll.u32 %s581_s0, 4  ;;  %s417_s9 = smov [#allocation2]   ;;  %s14_s8 = int_to_ptr.hbm [resolvable:$true] %s13_s8 }
   0x2   :  { %s15_s10 = sshll.u32 %s417_s9, 4  ;;  %s16_s10 = int_to_ptr.vmem [resolvable:$true] %s15_s10 }
   0x3   :  { %18 = dma.hbm_to_vmem [thread:$0]  %s14_s8, 32, %s16_s10, [#allocation3]  }
   0x4   :  { %413 = dma.done.wait [#allocation3], 32  }
   0x5   :  { %414 = vsyncadd [#allocation3], 4294967264  ;;  %v24_v0 = vlaneseq  ;;  %v418_v1 = vmov 0.0   ;;  %s419_s0 = smov [#allocation5]   ;;  %s346_s14 = sshll.u32 %s582_s1, 4  ;;  %s347_s14 = int_to_ptr.hbm [resolvable:$true] %s346_s14 }
   0x6   :  { %262 = vst [vmem:[#allocation5 + $0x8] sm:$0xff] %v418_v1  ;;  %s344_s11 = sshll.u32 %s419_s0, 4  ;;  %s420_s15 = smov 256   ;;  %s345_s11 = int_to_ptr.vmem [resolvable:$true] %s344_s11 }
   0x7   :  { %v437_v2 = vshrl.u32 %v24_v0, 7  ;;  %v440_v3 = vand.u32 127, %v24_v0  ;;  %264 = vst [vmem:[#allocation5 + $0x18] sm:$0xff] %v418_v1  ;;  %s421_s16 = smov 16  }
   0x8   :  { %266 = vst [vmem:[#allocation5 + $0x28] sm:$0xff] %v418_v1 }
   0x9   :  { %v61_v4 = vsub.s32 %v437_v2, %v440_v3  ;;  %268 = vst [vmem:[#allocation5 + $0x38] sm:$0xff] %v418_v1  ;;  %v26_v6 = vadd.s32 8, %v437_v2  ;;  %v27_v7 = vadd.s32 16, %v437_v2  ;;  %v28_v8 = vadd.s32 24, %v437_v2 }
   0xa   :  { %270 = vst [vmem:[#allocation5 + $0x48] sm:$0xff] %v418_v1  ;;  %v29_v9 = vadd.s32 32, %v437_v2  ;;  %v30_v11 = vadd.s32 40, %v437_v2  ;;  %v31_v13 = vadd.s32 48, %v437_v2  ;;  %v32_v15 = vadd.s32 56, %v437_v2 }
   0xb   :  { %vm129_vm0 = vcmp.eq.s32.totalorder %v61_v4, 1  ;;  %272 = vst [vmem:[#allocation5 + $0x58] sm:$0xff] %v418_v1  ;;  %v63_v10 = vsub.s32 %v26_v6, %v440_v3  ;;  %v65_v12 = vsub.s32 %v27_v7, %v440_v3  ;;  %v67_v14 = vsub.s32 %v28_v8, %v440_v3 }
   0xc   :  { %v195_v5 = vsel %vm129_vm0, 0.32456994, %v418_v1  ;;  %274 = vst [vmem:[#allocation5 + $0x68] sm:$0xff] %v418_v1  ;;  %v69_v16 = vsub.s32 %v29_v9, %v440_v3  ;;  %v33_v17 = vadd.s32 64, %v437_v2  ;;  %v71_v18 = vsub.s32 %v30_v11, %v440_v3 }
   0xd   :  { %261 = vst [vmem:[#allocation5] sm:$0xff] %v195_v5  ;;  %vm131_vm1 = vcmp.eq.s32.totalorder %v63_v10, 1  ;;  %v34_v19 = vadd.s32 72, %v437_v2  ;;  %vm133_vm2 = vcmp.eq.s32.totalorder %v65_v12, 1  ;;  %v73_v20 = vsub.s32 %v31_v13, %v440_v3 }
   0xe   :  { %276 = vst [vmem:[#allocation5 + $0x78] sm:$0xff] %v418_v1  ;;  %v35_v21 = vadd.s32 80, %v437_v2  ;;  %vm135_vm3 = vcmp.eq.s32.totalorder %v67_v14, 1  ;;  %v75_v22 = vsub.s32 %v32_v15, %v440_v3  ;;  %v36_v23 = vadd.s32 88, %v437_v2 }
   0xf   :  { %278 = vst [vmem:[#allocation5 + $0x88] sm:$0xff] %v418_v1  ;;  %v197_v24 = vsel %vm131_vm1, 0.32456994, %v418_v1  ;;  %vm137_vm4 = vcmp.eq.s32.totalorder %v69_v16, 1  ;;  %v77_v25 = vsub.s32 %v33_v17, %v440_v3  ;;  %v37_v26 = vadd.s32 96, %v437_v2 }
  0x10   :  { %280 = vst [vmem:[#allocation5 + $0x98] sm:$0xff] %v418_v1  ;;  %v199_v27 = vsel %vm133_vm2, 0.32456994, %v418_v1  ;;  %vm139_vm5 = vcmp.eq.s32.totalorder %v71_v18, 1  ;;  %v79_v28 = vsub.s32 %v34_v19, %v440_v3  ;;  %v38_v29 = vadd.s32 104, %v437_v2 }
  0x11   :  { %282 = vst [vmem:[#allocation5 + $0xa8] sm:$0xff] %v418_v1  ;;  %v201_v30 = vsel %vm135_vm3, 0.32456994, %v418_v1  ;;  %vm141_vm6 = vcmp.eq.s32.totalorder %v73_v20, 1  ;;  %v81_v31 = vsub.s32 %v35_v21, %v440_v3  ;;  %v39_v32 = vadd.s32 112, %v437_v2 }
  0x12   :  { %284 = vst [vmem:[#allocation5 + $0xb8] sm:$0xff] %v418_v1  ;;  %v203_v33 = vsel %vm137_vm4, 0.32456994, %v418_v1  ;;  %vm143_vm7 = vcmp.eq.s32.totalorder %v75_v22, 1  ;;  %v83_v34 = vsub.s32 %v36_v23, %v440_v3  ;;  %v40_v35 = vadd.s32 120, %v437_v2 }
  0x13   :  { %286 = vst [vmem:[#allocation5 + $0xc8] sm:$0xff] %v418_v1  ;;  %v205_v36 = vsel %vm139_vm5, 0.32456994, %v418_v1  ;;  %vm145_vm8 = vcmp.eq.s32.totalorder %v77_v25, 1  ;;  %v85_v37 = vsub.s32 %v37_v26, %v440_v3  ;;  %v41_v38 = vadd.s32 128, %v437_v2 }
  0x14   :  { %288 = vst [vmem:[#allocation5 + $0xd8] sm:$0xff] %v418_v1  ;;  %v207_v39 = vsel %vm141_vm6, 0.32456994, %v418_v1  ;;  %vm147_vm9 = vcmp.eq.s32.totalorder %v79_v28, 1  ;;  %v87_v40 = vsub.s32 %v38_v29, %v440_v3  ;;  %v512_v41 = vadd.s32 128, %v440_v3 }
  0x15   :  { %290 = vst [vmem:[#allocation5 + $0xe8] sm:$0xff] %v418_v1  ;;  %v209_v42 = vsel %vm143_vm7, 0.32456994, %v418_v1  ;;  %vm149_vm10 = vcmp.eq.s32.totalorder %v81_v31, 1  ;;  %v89_v43 = vsub.s32 %v39_v32, %v440_v3  ;;  %v42_v44 = vadd.s32 136, %v437_v2 }
  0x16   :  { %292 = vst [vmem:[#allocation5 + $0xf8] sm:$0xff] %v418_v1  ;;  %v211_v45 = vsel %vm145_vm8, 0.32456994, %v418_v1  ;;  %vm151_vm11 = vcmp.eq.s32.totalorder %v83_v34, 1  ;;  %v91_v46 = vsub.s32 %v40_v35, %v440_v3  ;;  %v43_v47 = vadd.s32 144, %v437_v2 }
  0x17   :  { %295 = vst [vmem:[#allocation5 + $0x110] sm:$0xff] %v418_v1  ;;  %v213_v48 = vsel %vm147_vm9, 0.32456994, %v418_v1  ;;  %vm153_vm12 = vcmp.eq.s32.totalorder %v85_v37, 1  ;;  %v93_v49 = vsub.s32 %v41_v38, %v440_v3  ;;  %v44_v50 = vadd.s32 152, %v437_v2 }
  0x18   :  { %297 = vst [vmem:[#allocation5 + $0x120] sm:$0xff] %v418_v1  ;;  %v215_v51 = vsel %vm149_vm10, 0.32456994, %v418_v1  ;;  %vm155_vm13 = vcmp.eq.s32.totalorder %v87_v40, 1  ;;  %v94_v52 = vsub.s32 %v41_v38, %v512_v41  ;;  %v45_v53 = vadd.s32 160, %v437_v2 }
  0x19   :  { %299 = vst [vmem:[#allocation5 + $0x130] sm:$0xff] %v418_v1  ;;  %v217_v54 = vsel %vm151_vm11, 0.32456994, %v418_v1  ;;  %vm157_vm14 = vcmp.eq.s32.totalorder %v89_v43, 1  ;;  %v96_v55 = vsub.s32 %v42_v44, %v512_v41  ;;  %v46_v56 = vadd.s32 168, %v437_v2 }
  0x1a   :  { %301 = vst [vmem:[#allocation5 + $0x140] sm:$0xff] %v418_v1  ;;  %v219_v57 = vsel %vm153_vm12, 0.32456994, %v418_v1  ;;  %vm159_vm15 = vcmp.eq.s32.totalorder %v91_v46, 1  ;;  %v98_v58 = vsub.s32 %v43_v47, %v512_v41  ;;  %v47_v59 = vadd.s32 176, %v437_v2 }
  0x1b   :  { %303 = vst [vmem:[#allocation5 + $0x150] sm:$0xff] %v418_v1  ;;  %v221_v60 = vsel %vm155_vm13, 0.32456994, %v418_v1  ;;  %vm161_vm0 = vcmp.eq.s32.totalorder %v93_v49, 1  ;;  %v100_v61 = vsub.s32 %v44_v50, %v512_v41  ;;  %v48_v62 = vadd.s32 184, %v437_v2 }
  0x1c   :  { %305 = vst [vmem:[#allocation5 + $0x160] sm:$0xff] %v418_v1  ;;  %v223_v63 = vsel %vm157_vm14, 0.32456994, %v418_v1  ;;  %vm162_vm1 = vcmp.eq.s32.totalorder %v94_v52, 1  ;;  %v102_v3 = vsub.s32 %v45_v53, %v512_v41  ;;  %v49_v4 = vadd.s32 192, %v437_v2 }
  0x1d   :  { %307 = vst [vmem:[#allocation5 + $0x170] sm:$0xff] %v418_v1  ;;  %v225_v5 = vsel %vm159_vm15, 0.32456994, %v418_v1  ;;  %vm164_vm2 = vcmp.eq.s32.totalorder %v96_v55, 1  ;;  %v104_v6 = vsub.s32 %v46_v56, %v512_v41  ;;  %v50_v7 = vadd.s32 200, %v437_v2 }
  0x1e   :  { %309 = vst [vmem:[#allocation5 + $0x180] sm:$0xff] %v418_v1  ;;  %v227_v8 = vsel %vm161_vm0, 0.32456994, %v418_v1  ;;  %vm166_vm3 = vcmp.eq.s32.totalorder %v98_v58, 1  ;;  %v106_v9 = vsub.s32 %v47_v59, %v512_v41  ;;  %v51_v10 = vadd.s32 208, %v437_v2 }
  0x1f   :  { %311 = vst [vmem:[#allocation5 + $0x190] sm:$0xff] %v418_v1  ;;  %v228_v11 = vsel %vm162_vm1, 0.32456994, %v418_v1  ;;  %vm168_vm4 = vcmp.eq.s32.totalorder %v100_v61, 1  ;;  %v108_v12 = vsub.s32 %v48_v62, %v512_v41  ;;  %v52_v13 = vadd.s32 216, %v437_v2 }
  0x20   :  { %313 = vst [vmem:[#allocation5 + $0x1a0] sm:$0xff] %v418_v1  ;;  %v230_v14 = vsel %vm164_vm2, 0.32456994, %v418_v1  ;;  %vm170_vm5 = vcmp.eq.s32.totalorder %v102_v3, 1  ;;  %v110_v15 = vsub.s32 %v49_v4, %v512_v41  ;;  %v53_v16 = vadd.s32 224, %v437_v2 }
  0x21   :  { %315 = vst [vmem:[#allocation5 + $0x1b0] sm:$0xff] %v418_v1  ;;  %v232_v17 = vsel %vm166_vm3, 0.32456994, %v418_v1  ;;  %vm172_vm6 = vcmp.eq.s32.totalorder %v104_v6, 1  ;;  %v112_v18 = vsub.s32 %v50_v7, %v512_v41  ;;  %v54_v19 = vadd.s32 232, %v437_v2 }
  0x22   :  { %317 = vst [vmem:[#allocation5 + $0x1c0] sm:$0xff] %v418_v1  ;;  %v234_v20 = vsel %vm168_vm4, 0.32456994, %v418_v1  ;;  %vm174_vm7 = vcmp.eq.s32.totalorder %v106_v9, 1  ;;  %v114_v21 = vsub.s32 %v51_v10, %v512_v41  ;;  %v55_v22 = vadd.s32 240, %v437_v2 }
  0x23   :  { %319 = vst [vmem:[#allocation5 + $0x1d0] sm:$0xff] %v418_v1  ;;  %v236_v23 = vsel %vm170_vm5, 0.32456994, %v418_v1  ;;  %vm176_vm8 = vcmp.eq.s32.totalorder %v108_v12, 1  ;;  %v56_v25 = vadd.s32 248, %v437_v2  ;;  %vm178_vm9 = vcmp.eq.s32.totalorder %v110_v15, 1 }
  0x24   :  { %321 = vst [vmem:[#allocation5 + $0x1e0] sm:$0xff] %v418_v1  ;;  %v238_v26 = vsel %vm172_vm6, 0.32456994, %v418_v1  ;;  %v57_v28 = vadd.s32 256, %v437_v2  ;;  %v240_v29 = vsel %vm174_vm7, 0.32456994, %v418_v1  ;;  %v122_v32 = vsub.s32 %v55_v22, %v512_v41 }
  0x25   :  { %323 = vst [vmem:[#allocation5 + $0x1f0] sm:$0xff] %v418_v1  ;;  %vm180_vm10 = vcmp.eq.s32.totalorder %v112_v18, 1  ;;  %v242_v31 = vsel %vm176_vm8, 0.32456994, %v418_v1  ;;  %vm182_vm11 = vcmp.eq.s32.totalorder %v114_v21, 1  ;;  %v124_v34 = vsub.s32 %v56_v25, %v512_v41 }
  0x26   :  { %325 = vst [vmem:[#allocation5 + $0x200] sm:$0x1] %v418_v1  ;;  %v246_v2 = vsel %vm180_vm10, 0.32456994, %v418_v1  ;;  %v126_v35 = vsub.s32 %v57_v28, %v512_v41  ;;  %v248_v37 = vsel %vm182_vm11, 0.32456994, %v418_v1 }
  0x27   :  { %263 = vst [vmem:[#allocation5 + $0x10] sm:$0xff] %v197_v24  ;;  %v116_v24 = vsub.s32 %v52_v13, %v512_v41  ;;  %vm190_vm15 = vcmp.eq.s32.totalorder %v122_v32, 1  ;;  %vm192_vm0 = vcmp.eq.s32.totalorder %v124_v34, 1  ;;  %vm336_vm2 = vcmp.lt.s32.totalorder %v24_v0, 256 }
  0x28   :  { %265 = vst [vmem:[#allocation5 + $0x20] sm:$0xff] %v199_v27  ;;  %v118_v27 = vsub.s32 %v53_v16, %v512_v41  ;;  %vm194_vm1 = vcmp.eq.s32.totalorder %v126_v35, 1  ;;  %v258_v43 = vsel %vm192_vm0, 0.32456994, %v418_v1 }
  0x29   :  { %267 = vst [vmem:[#allocation5 + $0x30] sm:$0xff] %v201_v30  ;;  %v120_v30 = vsub.s32 %v54_v19, %v512_v41  ;;  %vm184_vm12 = vcmp.eq.s32.totalorder %v116_v24, 1  ;;  %v256_v41 = vsel %vm190_vm15, 0.32456994, %v418_v1  ;;  %v260_v44 = vsel %vm194_vm1, 0.32456994, %v418_v1 }
  0x2a   :  { %269 = vst [vmem:[#allocation5 + $0x40] sm:$0xff] %v203_v33  ;;  %v244_v33 = vsel %vm178_vm9, 0.32456994, %v418_v1  ;;  %vm186_vm13 = vcmp.eq.s32.totalorder %v118_v27, 1  ;;  %v250_v38 = vsel %vm184_vm12, 0.32456994, %v418_v1 }
  0x2b   :  { %271 = vst [vmem:[#allocation5 + $0x50] sm:$0xff] %v205_v36  ;;  %v331_v36 = vld [vmem:[#allocation2] sm:$0x3]  ;;  %vm188_vm14 = vcmp.eq.s32.totalorder %v120_v30, 1 }
  0x2c   :  { %273 = vst [vmem:[#allocation5 + $0x60] sm:$0xff] %v207_v39  ;;  %v252_v39 = vsel %vm186_vm13, 0.32456994, %v418_v1  ;;  %v359_v40 = vadd.f32 -0.1307, %v331_v36 }
  0x2d   :  { %275 = vst [vmem:[#allocation5 + $0x70] sm:$0xff] %v209_v42  ;;  %v254_v42 = vsel %vm188_vm14, 0.32456994, %v418_v1 }
  0x2e   :  { %277 = vst [vmem:[#allocation5 + $0x80] sm:$0xff] %v211_v45  ;;  %v333_v45 = vmul.f32 3.2456994, %v359_v40 }
  0x2f   :  { %279 = vst [vmem:[#allocation5 + $0x90] sm:$0xff] %v213_v48 }
  0x30   :  { %281 = vst [vmem:[#allocation5 + $0xa0] sm:$0xff] %v215_v51 }
  0x31   :  { %283 = vst [vmem:[#allocation5 + $0xb0] sm:$0xff] %v217_v54 }
  0x32   :  { %285 = vst [vmem:[#allocation5 + $0xc0] sm:$0xff] %v219_v57 }
  0x33   :  { %287 = vst [vmem:[#allocation5 + $0xd0] sm:$0xff] %v221_v60 }
  0x34   :  { %289 = vst [vmem:[#allocation5 + $0xe0] sm:$0xff] %v223_v63 }
  0x35   :  { %291 = vst [vmem:[#allocation5 + $0xf0] sm:$0xff] %v225_v5 }
  0x36   :  { %293 = vst [vmem:[#allocation5 + $0x100] sm:$0xff] %v227_v8 }
  0x37   :  { %294 = vst [vmem:[#allocation5 + $0x108] sm:$0xff] %v228_v11 }
  0x38   :  { %296 = vst [vmem:[#allocation5 + $0x118] sm:$0xff] %v230_v14 }
  0x39   :  { %298 = vst [vmem:[#allocation5 + $0x128] sm:$0xff] %v232_v17 }
  0x3a   :  { %300 = vst [vmem:[#allocation5 + $0x138] sm:$0xff] %v234_v20 }
  0x3b   :  { %302 = vst [vmem:[#allocation5 + $0x148] sm:$0xff] %v236_v23 }
  0x3c   :  { %304 = vst [vmem:[#allocation5 + $0x158] sm:$0xff] %v238_v26 }
  0x3d   :  { %306 = vst [vmem:[#allocation5 + $0x168] sm:$0xff] %v240_v29 }
  0x3e   :  { %308 = vst [vmem:[#allocation5 + $0x178] sm:$0xff] %v242_v31 }
  0x3f   :  { %310 = vst [vmem:[#allocation5 + $0x188] sm:$0xff] %v244_v33 }
  0x40   :  { %312 = vst [vmem:[#allocation5 + $0x198] sm:$0xff] %v246_v2 }
  0x41   :  { %314 = vst [vmem:[#allocation5 + $0x1a8] sm:$0xff] %v248_v37 }
  0x42   :  { %316 = vst [vmem:[#allocation5 + $0x1b8] sm:$0xff] %v250_v38 }
  0x43   :  { %318 = vst [vmem:[#allocation5 + $0x1c8] sm:$0xff] %v252_v39 }
  0x44   :  { %320 = vst [vmem:[#allocation5 + $0x1d8] sm:$0xff] %v254_v42 }
  0x45   :  { %322 = vst [vmem:[#allocation5 + $0x1e8] sm:$0xff] %v256_v41 }
  0x46   :  { %324 = vst [vmem:[#allocation5 + $0x1f8] sm:$0xff] %v258_v43 }
  0x47   :  { %326 = vst [vmem:[#allocation5 + $0x208] sm:$0x1] %v260_v44 }
  0x48   :  { %338 = vst.msk [vmem:[#allocation5] ss:$8 sm:$0x3] %vm336_vm2, %v333_v45 }
  0x49   :  { %352 = dma.vmem_to_hbm [thread:$0]  %s345_s11, 8448, %s347_s14, [#allocation4], %s420_s15, %s420_s15, %s421_s16  }
  0x4a   :  { %415 = dma.done.wait [#allocation4], 8448  }
  0x4b   :  { %416 = vsyncadd [#allocation4], 4294958848 }
  0x4c   :  { %357 = vsyncpa [#allocation3], 1 }
  0x4d   :  { %358 = vsyncpa [#allocation4], 1 }

</bundles_post_ra>
